<compile_context>
chip_gen: v5e
topology: v5e:2x2
jax: 0.10.0
libtpu: 0.0.40
codegen_flags: <defaults>
</compile_context>

<pallas_src>
import math

import jax
import jax.numpy as jnp
from jax.experimental import pallas as pl
from jax.experimental.pallas import tpu as pltpu


def _round_up(v, m):
    return ((v + m - 1) // m) * m


def _vmem_capacity_bytes():
    """Physical per-TensorCore VMEM; conservative v7x default if unknown."""
    try:
        info = pltpu.get_tpu_info()
        cap = getattr(info, "vmem_capacity_bytes", None)
        if cap:
            return int(cap)
    except Exception:
        pass
    return 64 << 20


def _vmem_working_set(tn, c, e_pad, in_item, out_item):
    """Bytes of VMEM used by one grid step."""
    # weight (C, E_pad) + bias (1, E_pad) f32 (sublane-pads to 8), double buffered
    fixed = 2 * (c * e_pad * in_item + 8 * e_pad * 4)
    # x tile (C, tn) + out tile (tn, E_pad), double buffered
    tiles = 2 * (c * tn * in_item + tn * e_pad * out_item)
    # f32 matmul-result temporary (single copy, lives only inside the body)
    acc = tn * e_pad * 4
    return fixed + tiles + acc


def _pick_token_tile(n_tok, c, e_pad, in_item, out_item, vmem_budget, tn_cap):
    """Largest 128-multiple token tile whose working set fits vmem_budget."""
    fixed = 2 * (c * e_pad * in_item + 8 * e_pad * 4)
    per_tok = 2 * (c * in_item + e_pad * out_item) + e_pad * 4
    tn = (vmem_budget - fixed) // max(per_tok, 1)
    tn = max(128, min((int(tn) // 128) * 128, tn_cap))
    tn = min(tn, max(128, (n_tok // 128) * 128))     # never exceed the token extent
    return int(tn)


def _mlp_kernel(x_ref, w_ref, b_ref, o_ref):
    # x_ref : (C, tn)      channel-major activation tile, tokens lane-dense
    # w_ref : (C, E_pad)   weight, pre-transposed once in the wrapper
    # b_ref : (1, E_pad)   bias, f32, lane-dense
    # o_ref : (tn, E_pad)  output tile (E_pad multiple of 128 -> unmasked vst)
    acc = jax.lax.dot_general(
        x_ref[...], w_ref[...],
        dimension_numbers=(((0,), (0,)), ((), ())),
        preferred_element_type=jnp.float32)            # (tn, E_pad) f32 on MXU
    acc = acc + b_ref[...]                             # free sublane broadcast (VPU)
    o_ref[...] = acc.astype(o_ref.dtype)               # no accumulator transpose


def mlp_forward(x_nchw, w_t, b, *, out_dtype=None):
    """SegFormer MLP forward.

    x_nchw:    (B, C, H, W) activation, consumed in its native dtype/layout
               (no wrapper-side cast -> no extra HBM pass).
    w_t:       (E, C) nn.Linear weight (PyTorch layout).
    b:         (E,)   nn.Linear bias.
    out_dtype: output dtype (default: x dtype).  Pass jnp.bfloat16 on any
               generation (incl. v7x) to halve the dominant writeback bytes;
               accumulation stays f32 inside the kernel.
    Returns (B, H*W, E).
    """
    B, C, H, W = x_nchw.shape
    E = w_t.shape[0]
    N = H * W

    in_dtype = x_nchw.dtype
    out_dtype = out_dtype if out_dtype is not None else in_dtype

    # Free reshape: (B, C, H, W) -> (B, C, N).  No XLA transpose of the activation.
    x_bcn = x_nchw.reshape(B, C, N)

    # Lane-dense output: pad E up to a multiple of 128 (zeros in weight/bias).
    # One-time tiny weight transpose to (C, E_pad) so the kernel needs none.
    E_pad = max(128, _round_up(E, 128))
    w_ce = jnp.pad(w_t, ((0, E_pad - E), (0, 0))).T.astype(in_dtype)   # (C, E_pad)
    b_p = jnp.pad(b.astype(jnp.float32), (0, E_pad - E)).reshape(1, E_pad)

    # Keep the kernel token tile a multiple of 128; only pad in XLA for tiny N.
    if N < 128:
        N_k = 128
        x_bcn = jnp.pad(x_bcn, ((0, 0), (0, 0), (0, N_k - N)))
    else:
        N_k = N

    in_item = jnp.dtype(in_dtype).itemsize
    out_item = jnp.dtype(out_dtype).itemsize

    # Generation-aware VMEM budgeting.
    vmem_cap = _vmem_capacity_bytes()
    vmem_ceiling = int(0.75 * vmem_cap)            # headroom for Mosaic scratch
    if vmem_cap >= (96 << 20):                     # v5e / v6e: 128 MiB VMEM
        tile_budget, tn_cap = 40 << 20, 4096
    else:                                          # v7x: 64 MiB per TensorCore
        tile_budget, tn_cap = 20 << 20, 2048
    tile_budget = min(tile_budget, vmem_ceiling)

    tn = _pick_token_tile(N_k, C, E_pad, in_item, out_item, tile_budget, tn_cap)
    nt = pl.cdiv(N_k, tn)

    working = _vmem_working_set(tn, C, E_pad, in_item, out_item)
    vmem_limit = int(min(max(int(1.5 * working), 16 << 20), vmem_ceiling))

    cost = pl.CostEstimate(
        flops=int(2 * B * N_k * C * E_pad),
        transcendentals=0,
        bytes_accessed=int(B * C * N_k * in_item + C * E_pad * in_item
                           + E_pad * 4 + B * N_k * E_pad * out_item),
    )

    out = pl.pallas_call(
        _mlp_kernel,
        out_shape=jax.ShapeDtypeStruct((B, N_k, E_pad), out_dtype),
        grid_spec=pltpu.PrefetchScalarGridSpec(
            num_scalar_prefetch=0,
            grid=(B, nt),
            in_specs=[
                pl.BlockSpec((pl.Squeezed(), C, tn), lambda bi, ti: (bi, 0, ti)),
                pl.BlockSpec((C, E_pad), lambda bi, ti: (0, 0)),
                pl.BlockSpec((1, E_pad), lambda bi, ti: (0, 0)),
            ],
            out_specs=pl.BlockSpec((pl.Squeezed(), tn, E_pad),
                                   lambda bi, ti: (bi, ti, 0)),
        ),
        compiler_params=pltpu.CompilerParams(
            dimension_semantics=("parallel", "parallel"),
            vmem_limit_bytes=vmem_limit,
        ),
        cost_estimate=cost,
    )(x_bcn, w_ce, b_p)

    # Strip padding (identity for production shapes: N multiple of 128, E in {256,768}).
    return out[:, :N, :E]


def _run_case(case_key, B, C, H, W, E, out_dtype=None, atol=1e-5, rtol=1e-5):
    kx, kw, kb = jax.random.split(case_key, 3)
    x = jax.random.normal(kx, (B, C, H, W), dtype=jnp.float32)

    # Deterministic nn.Linear-style init: U(-1/sqrt(C), 1/sqrt(C)), PyTorch (E, C) layout.
    bound = 1.0 / math.sqrt(C)
    w_t = jax.random.uniform(kw, (E, C), minval=-bound, maxval=bound, dtype=jnp.float32)
    b = jax.random.uniform(kb, (E,), minval=-bound, maxval=bound, dtype=jnp.float32)

    # Reference in plain JAX: x.flatten(2).transpose(1,2) @ W^T + b
    ref = jnp.transpose(x.reshape(B, C, H * W), (0, 2, 1)) @ w_t.T + b

    out = jax.block_until_ready(mlp_forward(x, w_t, b, out_dtype=out_dtype))
    assert out.shape == (B, H * W, E), out.shape
    assert jnp.allclose(out.astype(jnp.float32), ref, atol=atol, rtol=rtol), \
        f"mismatch for case B={B},C={C},H={H},W={W},E={E},out_dtype={out_dtype}"


if __name__ == "__main__":
    key = jax.random.PRNGKey(0)
    k0, k1, k2, k3 = jax.random.split(key, 4)

    # Base case (module's small demo shapes): batch=2, input_dim=4, spatial=16x16, embed=32.
    _run_case(k0, B=2, C=4, H=16, W=16, E=32)

    # Ragged token count: N = 13*13 = 169 (>=128 but not a multiple of 128/tn)
    # -> exercises the Pallas-masked partial output block.
    _run_case(k1, B=2, C=4, H=13, W=13, E=32)

    # Tiny token count: N = 10*10 = 100 < 128 -> exercises the XLA-side token pad.
    _run_case(k2, B=1, C=4, H=10, W=10, E=32)

    # bf16 OUTPUT path (writeback-bandwidth optimization; f32 accumulate inside).
    _run_case(k3, B=2, C=4, H=16, W=16, E=32, out_dtype=jnp.bfloat16,
              atol=1e-1, rtol=1e-1)

    print("KERNEL_OK")
</pallas_src>

<mosaic_0001>
module attributes {stable_mosaic.version = 11 : i64} {
  func.func @_mlp_kernel(%arg0: i32, %arg1: i32, %arg2: memref<1x4x256xf32, #tpu.memory_space<vmem>>, %arg3: memref<4x128xf32, #tpu.memory_space<vmem>>, %arg4: memref<1x128xf32, #tpu.memory_space<vmem>>, %arg5: memref<1x256x128xf32, #tpu.memory_space<vmem>>) attributes {dimension_semantics = [#tpu.dimension_semantics<parallel>, #tpu.dimension_semantics<parallel>], iteration_bounds = array<i64: 2, 1>, scalar_prefetch = 0 : i64, scratch_operands = 0 : i64, tpu.core_type = #tpu.core_type<tc>, window_params = [{transform_indices = @transform_0, window_bounds = array<i64: 1, 4, 256>}, {pipeline_mode = #tpu.pipeline_mode<synchronous>, transform_indices = @transform_1, window_bounds = array<i64: 4, 128>}, {pipeline_mode = #tpu.pipeline_mode<synchronous>, transform_indices = @transform_2, window_bounds = array<i64: 1, 128>}, {transform_indices = @transform_3, window_bounds = array<i64: 1, 256, 128>}]} {
    %c0 = arith.constant 0 : index
    %c0_0 = arith.constant 0 : index
    %c0_1 = arith.constant 0 : index
    %0 = vector.load %arg2[%c0, %c0_0, %c0_1] : memref<1x4x256xf32, #tpu.memory_space<vmem>>, vector<1x4x256xf32>
    %1 = vector.shape_cast %0 : vector<1x4x256xf32> to vector<4x256xf32>
    %c0_2 = arith.constant 0 : index
    %c0_3 = arith.constant 0 : index
    %2 = vector.load %arg3[%c0_2, %c0_3] : memref<4x128xf32, #tpu.memory_space<vmem>>, vector<4x128xf32>
    %cst = arith.constant dense<0.000000e+00> : vector<256x128xf32>
    %3 = tpu.matmul %1, %2, %cst {dimension_numbers = #tpu.dot_dimension_numbers<[0], [0], [1], [1], [0, 1, 1, 1], [], []>} : vector<4x256xf32>, vector<4x128xf32>, vector<256x128xf32> -> vector<256x128xf32>
    %c0_4 = arith.constant 0 : index
    %c0_5 = arith.constant 0 : index
    %4 = vector.load %arg4[%c0_4, %c0_5] : memref<1x128xf32, #tpu.memory_space<vmem>>, vector<1x128xf32>
    %5 = vector.broadcast %4 : vector<1x128xf32> to vector<256x128xf32>
    %6 = arith.addf %3, %5 : vector<256x128xf32>
    %c0_6 = arith.constant 0 : index
    %c0_7 = arith.constant 0 : index
    %c0_8 = arith.constant 0 : index
    %7 = vector.load %arg5[%c0_6, %c0_7, %c0_8] : memref<1x256x128xf32, #tpu.memory_space<vmem>>, vector<1x256x128xf32>
    %8 = vector.shape_cast %7 : vector<1x256x128xf32> to vector<256x128xf32>
    %9 = vector.shape_cast %6 : vector<256x128xf32> to vector<1x256x128xf32>
    tpu.vector_store %arg5[%c0_6, %c0_7, %c0_8], %9 {strides = array<i32>} : memref<1x256x128xf32, #tpu.memory_space<vmem>>, vector<1x256x128xf32>,
    return
  }
  func.func @transform_0(%arg0: i32, %arg1: i32) -> (i32, i32, i32) {
    %c0_i32 = arith.constant 0 : i32
    %c0_i32_0 = arith.constant 0 : i32
    return %arg0, %c0_i32, %arg1 : i32, i32, i32
  }
  func.func @transform_1(%arg0: i32, %arg1: i32) -> (i32, i32) {
    %c0_i32 = arith.constant 0 : i32
    %c0_i32_0 = arith.constant 0 : i32
    %c0_i32_1 = arith.constant 0 : i32
    return %c0_i32, %c0_i32_0 : i32, i32
  }
  func.func @transform_2(%arg0: i32, %arg1: i32) -> (i32, i32) {
    %c0_i32 = arith.constant 0 : i32
    %c0_i32_0 = arith.constant 0 : i32
    %c0_i32_1 = arith.constant 0 : i32
    return %c0_i32, %c0_i32_0 : i32, i32
  }
  func.func @transform_3(%arg0: i32, %arg1: i32) -> (i32, i32, i32) {
    %c0_i32 = arith.constant 0 : i32
    %c0_i32_0 = arith.constant 0 : i32
    return %arg0, %arg1, %c0_i32 : i32, i32, i32
  }
}

</mosaic_0001>

<bundles_post_ra>
// kernel: tpu_custom_call.1
= control target key start
LH: loop header
LB: loop body
LE: loop exit
PB: predicated region body
PF: predicated region fallthrough
CT: control target
= control target key end

     0   :  { %8 = vsyncpa [#allocation3], 0  ;;  %s1218_s0 = inlined_call_operand.hbm [shape: f32[2,4,256], index: 0, kind: input, shape index: {}]   ;;  %s1219_s1 = inlined_call_operand.hbm [shape: f32[4,128], index: 1, kind: input, shape index: {}]   ;;  %s1220_s2 = inlined_call_operand.vmem [shape: f32[1,128], index: 2, kind: input, shape index: {}]   ;;  %s1221_s3 = inlined_call_operand.hbm [shape: f32[2,256,128], index: 3, kind: output, shape index: {}]  }
   0x1   :  { %10 = vsyncpa [#allocation3 + $0x1], 0 }
   0x2   :  { %11 = vsyncpa [#allocation6], 0 }
   0x3   :  { %12 = vsyncpa [#allocation4], 0 }
   0x4   :  { %14 = vsyncpa [#allocation4 + $0x1], 0  ;;  %s964_s12 = smov 0   ;;  %s966_s13 = smov 0  }
   0x5   :  { %s968_s14 = smov 0   ;;  %s970_s15 = smov 0  }
   0x6   :  { %s972_s16 = smov 0   ;;  %s974_s17 = smov 0  }
   0x7 LB: > { %s661_s18 = sadd.s32 4294967295, %s939_s17   ;;  %s662_s19 = sadd.s32 4294967294, %s939_s17   ;;  %s939_s17 = sphi %s974_s17, %s20_s17   ;;  %s935_s16 = sphi %s972_s16, %s1233_s16   ;;  %s931_s15 = sphi %s970_s15, %s1232_s15   ;;  %s927_s14 = sphi %s968_s14, %s1231_s14   ;;  %s923_s13 = sphi %s966_s13, %s1230_s13   ;;  %s919_s12 = sphi %s964_s12, %s1229_s12  }
   0x8   : > { %p54_p0 = scmp.ne.s32.totalorder %s923_s13, %s919_s12  ;;  %p998_p1 = scmp.eq.s32.totalorder %s661_s18, 0 }
   0x9   : > { %p1002_p2 = scmp.eq.s32.totalorder %s661_s18, 1  ;;  %p128_p3 = scmp.eq.s32.totalorder %s662_s19, 1 }
   0xa   : > { %p1008_p4 = por %p998_p1, %p54_p0  ;;  %p663_p5 = scmp.ge.s32.totalorder %s939_s17, 1 }
   0xb   : > { %p1013_p6 = por %p128_p3, %p54_p0  ;;  %p135_p7 = scmp.lt.s32.totalorder %s939_s17, 3 }
   0xc   : > { %s147_s26 = sshll.u32 %s1219_s1, 4  ;;  %p665_p9 = scmp.ge.s32.totalorder %s939_s17, 2  ;;  %s148_s26 = int_to_ptr.hbm [resolvable:$true] %s147_s26 }
   0xd   : > { %p1021_p8 = pnand %p663_p5, %p135_p7  ;;  %s941_s28 = smov [#allocation5]  }
   0xe   : > { %s149_s29 = sshll.u32 %s941_s28, 4  ;;  %s32_s30 = sadd.s32 1, %s935_s16  ;;  %s150_s29 = int_to_ptr.vmem [resolvable:$true] %s149_s29 }
   0xf   : > { %p724_p10 = pneg %p1021_p8  ;;  %p34_p12 = scmp.ge.s32.totalorder %s32_s30, 2 }
  0x10   : > { %s41_s4 = sadd.s32 1, %s927_s14  ;;  %p48_p13 = scmp.ne.s32.totalorder %s927_s14, %s923_s13 }
  0x11   : > { %p725_p11 = pnand %p724_p10, %p998_p1  ;;  %p49_p0 = scmp.eq.s32.totalorder %s939_s17, 0 }
  0x12   : > { %s1235_s30 = smov (%p34_p12, %s32_s30), 0  ;;  %p1043_p5 = por %p1002_p2, %p48_p13 }
  0x13   : > { %727 = dma.hbm_to_vmem [thread:$0]  (!%p725_p11), %s148_s26, 64, %s150_s29, [#allocation6]  }
  0x14   : > { %p1037_p3 = por %p49_p0, %p48_p13  ;;  %s36_s7 = ssub.s32 %s935_s16, %s1235_s30 }
  0x15   : > { %p737_p7 = scmp.lt.s32.totalorder %s939_s17, 2  ;;  %p39_p10 = scmp.eq.s32.totalorder %s36_s7, 0 }
  0x16   : > { %s163_s8 = sand.u32 1, %s927_s14   ;;  %s711_s11 = sshll.u32 %s935_s16, 3 }
  0x17   : > { %s666_s9 = sshll.u32 %s163_s8, 3  ;;  %s174_s24 = scalar_lea.hbm %s1218_s0, %s711_s11 }
  0x18   : > { %s1052_s10 = scalar_select %p39_p10, %s927_s14, %s41_s4  }
  0x19   : > { %s167_s25 = scalar_lea.vmem [#allocation2], %s666_s9  ;;  %s176_s21 = sshll.u32 %s174_s24, 4  ;;  %s177_s21 = int_to_ptr.hbm [resolvable:$true] %s176_s21 }
  0x1a   : > { %s178_s26 = sshll.u32 %s167_s25, 4  ;;  %p729_p2 = pnand %p737_p7, %p1037_p3  ;;  %s179_s26 = int_to_ptr.vmem [resolvable:$true] %s178_s26 }
  0x1b   : > { %s164_s28 = scalar_lea.sflag [#allocation3], %s163_s8  ;;  %187 = sbr.rel (%p1021_p8) target bundleno = 589 (0x24d), region = 32 }
  0x1c   : > { %731 = dma.hbm_to_vmem [thread:$0]  (!%p729_p2), %s177_s21, 128, %s179_s26, %s164_s28  }
  0x1d   : > { %s1063_s29 = sand.u32 (!%p1021_p8), 1, %s923_s13  }
  0x1e   : > { %s670_s4 = sshll.u32 (!%p1021_p8), %s1063_s29, 3  ;;  %s190_s7 = scalar_lea.sflag (!%p1021_p8), [#allocation3], %s1063_s29 }
  0x1f   : > { %s193_s9 = scalar_lea.vmem (!%p1021_p8), [#allocation2], %s670_s4 }
  0x20   : > { %906 = dma.done.wait (%p1008_p4), %s190_s7, 128  }
  0x21   : > { %908 = vsyncadd (%p1008_p4), %s190_s7, 4294967168 }
  0x22   : > { %910 = dma.done.wait (%p998_p1), [#allocation6], 64  }
  0x23   : > { %912 = vsyncadd (%p998_p1), [#allocation6], 4294967232  ;;  %v224_v0 = vld [vmem:[%s193_s9] sm:$0xff]  ;;  %v225_v2 = vld [vmem:[#allocation5] sm:$0xf]  ;;  %vm397_vm0 = vcmask 1043456  }
  0x24   : > { %231 = vst [vmem:[#allocation1] ss:$2 sm:$0xff] %v224_v0  ;;  %714 = vmatpush.msk.msra.mxu2 %vm397_vm0, %v225_v2  ;;  %715 = vmatpush.msk.msra.mxu3 %vm397_vm0, %v225_v2  ;;  %vm300_vm1 = vcmask 31744   ;;  %s672_s20 = sshll.u32 %s1063_s29, 8  ;;  %v1096_v21 = vld [vmem:[%s1220_s2] ss:$0 sm:$0xff] }
  0x25   : > { %673 = vmatpush.msk.msra.mxu0 %vm397_vm0, %v225_v2  ;;  %713 = vmatpush.msk.msra.mxu1 %vm397_vm0, %v225_v2  ;;  %s1099_s5 = scalar_lea.vmem [#allocation7], %s672_s20  ;;  %s712_s8 = sshll.u32 %s931_s15, 8 }
  0x26   : > { %s560_s19 = scalar_lea.hbm %s1221_s3, %s712_s8  ;;  %s561_s24 = sshll.u32 %s1099_s5, 4  ;;  %s562_s24 = int_to_ptr.vmem [resolvable:$true] %s561_s24 }
  0x27   : > { %s563_s25 = sshll.u32 %s560_s19, 4  ;;  %s547_s26 = scalar_lea.sflag [#allocation4], %s1063_s29  ;;  %s564_s25 = int_to_ptr.hbm [resolvable:$true] %s563_s25 }
  0x28   : > { %s867_s21 = sshra.s32 %s564_s25, 4  ;;  %s873_s7 = scalar_lea.hbm %s1221_s3, 512  ;;  %s868_s21 = int_to_ptr.hbm [resolvable:$true] %s867_s21 }
  0x29   : > { %s869_s15 = scalar_lea.hbm %s868_s21, 256  ;;  %p874_p11 = scmp.lt.s32.totalorder %s868_s21, %s1221_s3 }
  0x2a   : > { %p870_p1 = scmp.ne.s32.totalorder %s868_s21, %s869_s15  ;;  %p875_p12 = scmp.lt.s32.totalorder %s873_s7, %s869_s15 }
  0x2b   : > { %v233_v1 = vld.sshfl [vmem:[#allocation1 + $0x8] sm:$0xff pattern:$0x75316420]  ;;  %v232_v3 = vld.sshfl [vmem:[#allocation1] sm:$0xff pattern:$0x75316420] }
  0x2c   : > { %268 = vxpose.xlu0.b32.start.end [1/1] (short) %v233_v1, 128  ;;  %p871_p4 = pnand %p870_p1, %p1043_p5  ;;  %p876_p13 = por %p875_p12, %p874_p11 }
  0x2e   : > { %p872_p8 = pneg %p871_p4 }
  0x30   : > { %p877_p0 = pnand %p876_p13, %p872_p8 }
  0xac   : > { %236 = vxpose.xlu0.b32.start.end [1/1] (short) %v232_v3, 128 }
  0xd0   : > { %v284_v4 = vpop.trf.xlu0 }
  0xd1   : > { %690 = vmatmul.msk.f32.vlgmr.msra.gmra.mxu2 %vm300_vm1, %v284_v4 }
  0xd8   : > { %v285_v5 = vpop.trf.xlu0 }
  0xd9   : > { %691 = vmatmul.msk.f32.gmra.mxu2 %vm300_vm1, %v285_v5 }
  0xe0   : > { %v286_v6 = vpop.trf.xlu0 }
  0xe1   : > { %692 = vmatmul.msk.f32.gmra.mxu2 %vm300_vm1, %v286_v6 }
  0xe8   : > { %v287_v7 = vpop.trf.xlu0 }
  0xe9   : > { %693 = vmatmul.msk.f32.gmra.mxu2 %vm300_vm1, %v287_v7 }
  0xf0   : > { %v288_v8 = vpop.trf.xlu0 }
  0xf1   : > { %694 = vmatmul.msk.f32.gmra.mxu2 %vm300_vm1, %v288_v8 }
  0xf8   : > { %v289_v9 = vpop.trf.xlu0 }
  0xf9   : > { %695 = vmatmul.msk.f32.gmra.mxu2 %vm300_vm1, %v289_v9 }
 0x100   : > { %v290_v10 = vpop.trf.xlu0 }
 0x101   : > { %696 = vmatmul.msk.f32.gmra.mxu2 %vm300_vm1, %v290_v10 }
 0x108   : > { %v291_v11 = vpop.trf.xlu0 }
 0x109   : > { %697 = vmatmul.msk.f32.gmra.mxu2 %vm300_vm1, %v291_v11 }
 0x110   : > { %v292_v12 = vpop.trf.xlu0 }
 0x111   : > { %698 = vmatmul.msk.f32.vlgmr.msra.gmra.mxu3 %vm300_vm1, %v292_v12 }
 0x118   : > { %v293_v13 = vpop.trf.xlu0 }
 0x119   : > { %699 = vmatmul.msk.f32.gmra.mxu3 %vm300_vm1, %v293_v13 }
 0x120   : > { %v294_v14 = vpop.trf.xlu0 }
 0x121   : > { %700 = vmatmul.msk.f32.gmra.mxu3 %vm300_vm1, %v294_v14 }
 0x128   : > { %v295_v15 = vpop.trf.xlu0 }
 0x129   : > { %701 = vmatmul.msk.f32.gmra.mxu3 %vm300_vm1, %v295_v15 }
 0x130   : > { %v296_v16 = vpop.trf.xlu0 }
 0x131   : > { %702 = vmatmul.msk.f32.gmra.mxu3 %vm300_vm1, %v296_v16 }
 0x138   : > { %v297_v17 = vpop.trf.xlu0 }
 0x139   : > { %703 = vmatmul.msk.f32.gmra.mxu3 %vm300_vm1, %v297_v17 }
 0x140   : > { %v298_v18 = vpop.trf.xlu0 }
 0x141   : > { %704 = vmatmul.msk.f32.gmra.mxu3 %vm300_vm1, %v298_v18 }
 0x148   : > { %v299_v19 = vpop.trf.xlu0 }
 0x149   : > { %705 = vmatmul.msk.f32.gmra.mxu3 %vm300_vm1, %v299_v19 }
 0x150   : > { %v252_v20 = vpop.trf.xlu0 }
 0x151   : > { %674 = vmatmul.msk.f32.vlgmr.msra.gmra.mxu0 %vm300_vm1, %v252_v20 }
 0x154   : > { %v466_v22 = vpop.f32.mrf.mxu2 }
 0x155   : > { %v467_v23 = vadd.f32 %v1096_v21, %v466_v22 }
 0x157   : > { %530 = vst [vmem:[%s1099_s5 + $0x80] sm:$0xff] %v467_v23 }
 0x158   : > { %v253_v24 = vpop.trf.xlu0 }
 0x159   : > { %675 = vmatmul.msk.f32.gmra.mxu0 %vm300_vm1, %v253_v24 }
 0x15c   : > { %v469_v25 = vpop.f32.mrf.mxu2 }
 0x15d   : > { %v470_v26 = vadd.f32 %v1096_v21, %v469_v25 }
 0x15f   : > { %531 = vst [vmem:[%s1099_s5 + $0x88] sm:$0xff] %v470_v26 }
 0x160   : > { %v254_v27 = vpop.trf.xlu0 }
 0x161   : > { %676 = vmatmul.msk.f32.gmra.mxu0 %vm300_vm1, %v254_v27 }
 0x164   : > { %v472_v28 = vpop.f32.mrf.mxu2 }
 0x165   : > { %v473_v29 = vadd.f32 %v1096_v21, %v472_v28 }
 0x167   : > { %532 = vst [vmem:[%s1099_s5 + $0x90] sm:$0xff] %v473_v29 }
 0x168   : > { %v255_v30 = vpop.trf.xlu0 }
 0x169   : > { %677 = vmatmul.msk.f32.gmra.mxu0 %vm300_vm1, %v255_v30 }
 0x16c   : > { %v475_v31 = vpop.f32.mrf.mxu2 }
 0x16d   : > { %v476_v32 = vadd.f32 %v1096_v21, %v475_v31 }
 0x16f   : > { %533 = vst [vmem:[%s1099_s5 + $0x98] sm:$0xff] %v476_v32 }
 0x170   : > { %v256_v33 = vpop.trf.xlu0 }
 0x171   : > { %678 = vmatmul.msk.f32.gmra.mxu0 %vm300_vm1, %v256_v33 }
 0x174   : > { %v478_v34 = vpop.f32.mrf.mxu2 }
 0x175   : > { %v479_v35 = vadd.f32 %v1096_v21, %v478_v34 }
 0x177   : > { %534 = vst [vmem:[%s1099_s5 + $0xa0] sm:$0xff] %v479_v35 }
 0x178   : > { %v257_v36 = vpop.trf.xlu0 }
 0x179   : > { %679 = vmatmul.msk.f32.gmra.mxu0 %vm300_vm1, %v257_v36 }
 0x17c   : > { %v481_v37 = vpop.f32.mrf.mxu2 }
 0x17d   : > { %v482_v38 = vadd.f32 %v1096_v21, %v481_v37 }
 0x17f   : > { %535 = vst [vmem:[%s1099_s5 + $0xa8] sm:$0xff] %v482_v38 }
 0x180   : > { %v258_v39 = vpop.trf.xlu0 }
 0x181   : > { %680 = vmatmul.msk.f32.gmra.mxu0 %vm300_vm1, %v258_v39 }
 0x184   : > { %v484_v40 = vpop.f32.mrf.mxu2 }
 0x185   : > { %v485_v41 = vadd.f32 %v1096_v21, %v484_v40 }
 0x187   : > { %536 = vst [vmem:[%s1099_s5 + $0xb0] sm:$0xff] %v485_v41 }
 0x188   : > { %v259_v42 = vpop.trf.xlu0 }
 0x189   : > { %681 = vmatmul.msk.f32.gmra.mxu0 %vm300_vm1, %v259_v42 }
 0x18c   : > { %v487_v43 = vpop.f32.mrf.mxu2 }
 0x18d   : > { %v488_v44 = vadd.f32 %v1096_v21, %v487_v43 }
 0x18f   : > { %537 = vst [vmem:[%s1099_s5 + $0xb8] sm:$0xff] %v488_v44 }
 0x190   : > { %v260_v45 = vpop.trf.xlu0 }
 0x191   : > { %682 = vmatmul.msk.f32.vlgmr.msra.gmra.mxu1 %vm300_vm1, %v260_v45 }
 0x194   : > { %v490_v46 = vpop.f32.mrf.mxu3 }
 0x195   : > { %v491_v47 = vadd.f32 %v1096_v21, %v490_v46 }
 0x197   : > { %538 = vst [vmem:[%s1099_s5 + $0xc0] sm:$0xff] %v491_v47 }
 0x198   : > { %v261_v48 = vpop.trf.xlu0 }
 0x199   : > { %683 = vmatmul.msk.f32.gmra.mxu1 %vm300_vm1, %v261_v48 }
 0x19c   : > { %v493_v49 = vpop.f32.mrf.mxu3 }
 0x19d   : > { %v494_v50 = vadd.f32 %v1096_v21, %v493_v49 }
 0x19f   : > { %539 = vst [vmem:[%s1099_s5 + $0xc8] sm:$0xff] %v494_v50 }
 0x1a0   : > { %v262_v51 = vpop.trf.xlu0 }
 0x1a1   : > { %684 = vmatmul.msk.f32.gmra.mxu1 %vm300_vm1, %v262_v51 }
 0x1a4   : > { %v496_v52 = vpop.f32.mrf.mxu3 }
 0x1a5   : > { %v497_v53 = vadd.f32 %v1096_v21, %v496_v52 }
 0x1a7   : > { %540 = vst [vmem:[%s1099_s5 + $0xd0] sm:$0xff] %v497_v53 }
 0x1a8   : > { %v263_v54 = vpop.trf.xlu0 }
 0x1a9   : > { %685 = vmatmul.msk.f32.gmra.mxu1 %vm300_vm1, %v263_v54 }
 0x1ac   : > { %v499_v55 = vpop.f32.mrf.mxu3 }
 0x1ad   : > { %v500_v56 = vadd.f32 %v1096_v21, %v499_v55 }
 0x1af   : > { %541 = vst [vmem:[%s1099_s5 + $0xd8] sm:$0xff] %v500_v56 }
 0x1b0   : > { %v264_v57 = vpop.trf.xlu0 }
 0x1b1   : > { %686 = vmatmul.msk.f32.gmra.mxu1 %vm300_vm1, %v264_v57 }
 0x1b4   : > { %v502_v58 = vpop.f32.mrf.mxu3 }
 0x1b5   : > { %v503_v59 = vadd.f32 %v1096_v21, %v502_v58 }
 0x1b7   : > { %542 = vst [vmem:[%s1099_s5 + $0xe0] sm:$0xff] %v503_v59 }
 0x1b8   : > { %v265_v60 = vpop.trf.xlu0 }
 0x1b9   : > { %687 = vmatmul.msk.f32.gmra.mxu1 %vm300_vm1, %v265_v60 }
 0x1bc   : > { %v505_v61 = vpop.f32.mrf.mxu3 }
 0x1bd   : > { %v506_v62 = vadd.f32 %v1096_v21, %v505_v61 }
 0x1bf   : > { %543 = vst [vmem:[%s1099_s5 + $0xe8] sm:$0xff] %v506_v62 }
 0x1c0   : > { %v266_v63 = vpop.trf.xlu0 }
 0x1c1   : > { %688 = vmatmul.msk.f32.gmra.mxu1 %vm300_vm1, %v266_v63 }
 0x1c4   : > { %v508_v0 = vpop.f32.mrf.mxu3 }
 0x1c5   : > { %v509_v1 = vadd.f32 %v1096_v21, %v508_v0 }
 0x1c7   : > { %544 = vst [vmem:[%s1099_s5 + $0xf0] sm:$0xff] %v509_v1 }
 0x1c8   : > { %v267_v2 = vpop.trf.xlu0 }
 0x1c9   : > { %689 = vmatmul.msk.f32.gmra.mxu1 %vm300_vm1, %v267_v2 }
 0x1cc   : > { %v511_v3 = vpop.f32.mrf.mxu3 }
 0x1cd   : > { %v512_v4 = vadd.f32 %v1096_v21, %v511_v3 }
 0x1ce   : > { %v418_v5 = vpop.f32.mrf.mxu0 }
 0x1cf   : > { %545 = vst [vmem:[%s1099_s5 + $0xf8] sm:$0xff] %v512_v4  ;;  %v419_v6 = vadd.f32 %v1096_v21, %v418_v5 }
 0x1d1   : > { %514 = vst [vmem:[%s1099_s5] sm:$0xff] %v419_v6 }
 0x1d6   : > { %v421_v7 = vpop.f32.mrf.mxu0 }
 0x1d7   : > { %v422_v8 = vadd.f32 %v1096_v21, %v421_v7 }
 0x1d9   : > { %515 = vst [vmem:[%s1099_s5 + $0x8] sm:$0xff] %v422_v8 }
 0x1de   : > { %v424_v9 = vpop.f32.mrf.mxu0 }
 0x1df   : > { %v425_v10 = vadd.f32 %v1096_v21, %v424_v9 }
 0x1e1   : > { %516 = vst [vmem:[%s1099_s5 + $0x10] sm:$0xff] %v425_v10 }
 0x1e6   : > { %v427_v11 = vpop.f32.mrf.mxu0 }
 0x1e7   : > { %v428_v12 = vadd.f32 %v1096_v21, %v427_v11 }
 0x1e9   : > { %517 = vst [vmem:[%s1099_s5 + $0x18] sm:$0xff] %v428_v12 }
 0x1ee   : > { %v430_v13 = vpop.f32.mrf.mxu0 }
 0x1ef   : > { %v431_v14 = vadd.f32 %v1096_v21, %v430_v13 }
 0x1f1   : > { %518 = vst [vmem:[%s1099_s5 + $0x20] sm:$0xff] %v431_v14 }
 0x1f6   : > { %v433_v15 = vpop.f32.mrf.mxu0 }
 0x1f7   : > { %v434_v16 = vadd.f32 %v1096_v21, %v433_v15 }
 0x1f9   : > { %519 = vst [vmem:[%s1099_s5 + $0x28] sm:$0xff] %v434_v16 }
 0x1fe   : > { %v436_v17 = vpop.f32.mrf.mxu0 }
 0x1ff   : > { %v437_v18 = vadd.f32 %v1096_v21, %v436_v17 }
 0x201   : > { %520 = vst [vmem:[%s1099_s5 + $0x30] sm:$0xff] %v437_v18 }
 0x206   : > { %v439_v19 = vpop.f32.mrf.mxu0 }
 0x207   : > { %v440_v20 = vadd.f32 %v1096_v21, %v439_v19 }
 0x209   : > { %521 = vst [vmem:[%s1099_s5 + $0x38] sm:$0xff] %v440_v20 }
 0x20e   : > { %v442_v22 = vpop.f32.mrf.mxu1 }
 0x20f   : > { %v443_v23 = vadd.f32 %v1096_v21, %v442_v22 }
 0x211   : > { %522 = vst [vmem:[%s1099_s5 + $0x40] sm:$0xff] %v443_v23 }
 0x216   : > { %v445_v24 = vpop.f32.mrf.mxu1 }
 0x217   : > { %v446_v25 = vadd.f32 %v1096_v21, %v445_v24 }
 0x219   : > { %523 = vst [vmem:[%s1099_s5 + $0x48] sm:$0xff] %v446_v25 }
 0x21e   : > { %v448_v26 = vpop.f32.mrf.mxu1 }
 0x21f   : > { %v449_v27 = vadd.f32 %v1096_v21, %v448_v26 }
 0x221   : > { %524 = vst [vmem:[%s1099_s5 + $0x50] sm:$0xff] %v449_v27 }
 0x226   : > { %v451_v28 = vpop.f32.mrf.mxu1 }
 0x227   : > { %v452_v29 = vadd.f32 %v1096_v21, %v451_v28 }
 0x229   : > { %525 = vst [vmem:[%s1099_s5 + $0x58] sm:$0xff] %v452_v29 }
 0x22e   : > { %v454_v30 = vpop.f32.mrf.mxu1 }
 0x22f   : > { %v455_v31 = vadd.f32 %v1096_v21, %v454_v30 }
 0x231   : > { %526 = vst [vmem:[%s1099_s5 + $0x60] sm:$0xff] %v455_v31 }
 0x236   : > { %v457_v32 = vpop.f32.mrf.mxu1 }
 0x237   : > { %v458_v33 = vadd.f32 %v1096_v21, %v457_v32 }
 0x239   : > { %527 = vst [vmem:[%s1099_s5 + $0x68] sm:$0xff] %v458_v33 }
 0x23e   : > { %v460_v34 = vpop.f32.mrf.mxu1 }
 0x23f   : > { %v461_v35 = vadd.f32 %v1096_v21, %v460_v34 }
 0x241   : > { %528 = vst [vmem:[%s1099_s5 + $0x70] sm:$0xff] %v461_v35 }
 0x246   : > { %v463_v36 = vpop.f32.mrf.mxu1 }
 0x247   : > { %v464_v37 = vadd.f32 %v1096_v21, %v463_v36 }
 0x249   : > { %529 = vst [vmem:[%s1099_s5 + $0x78] sm:$0xff] %v464_v37 }
 0x24a   : > { %880 = shalt.err (!%p877_p0)
}
 0x24b   : > { %s942_s29 = smov 128   ;;  %s943_s22 = smov 8  }
 0x24c   : > { %722 = dma.vmem_to_hbm [thread:$0]  (%p1043_p5), %s562_s24, 4096, %s564_s25, %s547_s26, %s942_s29, %s942_s29, %s943_s22  }
 0x24d PF: > { %s578_s27 = sand.u32 1, %s919_s12   ;;  %p733_p3 = pnand %p665_p9, %p1013_p6 }
 0x24e   : > { %s579_s5 = scalar_lea.sflag [#allocation4], %s578_s27 }
 0x24f   : > { %p734_p7 = pneg %p733_p3 }
 0x251   : > { %914 = dma.done.wait (%p734_p7), %s579_s5, 4096  }
 0x252   : > { %916 = vsyncadd (%p734_p7), %s579_s5, 4294963200  ;;  %s20_s17 = sadd.s32 1, %s939_s17   ;;  %s1229_s12 = smov %s923_s13 }
 0x253   : > { %p17_p10 = scmp.ge.s32.totalorder %s20_s17, 4   ;;  %s1230_s13 = smov %s927_s14 }
 0x254   : > { %s1231_s14 = smov %s1052_s10  ;;  %s1232_s15 = smov %s935_s16 }
 0x255   : > { %s1233_s16 = smov %s1235_s30  ;;  %19 = sbr.rel (!%p17_p10) target bundleno = 7 (0x7), region = 81 }
 0x25a   :  { %585 = vsyncpa [#allocation3], 1 }
 0x25b   :  { %587 = vsyncpa [#allocation3 + $0x1], 1 }
 0x25c   :  { %588 = vsyncpa [#allocation6], 1 }
 0x25d   :  { %589 = vsyncpa [#allocation4], 1 }
 0x25e   :  { %591 = vsyncpa [#allocation4 + $0x1], 1 }

</bundles_post_ra>
